<compile_context>
chip_gen: v5e
topology: v5e:2x2
jax: 0.10.0
libtpu: 0.0.40
codegen_flags: <defaults>
</compile_context>

<pallas_src>
from typing import Optional, Tuple

import jax
import jax.numpy as jnp
from jax.experimental import pallas as pl
from jax.experimental.pallas import tpu as pltpu


def _copy_kernel(x_ref, o_ref):
    # Identity copy of the current lane-dense tile (full-width VMEM load+store).
    o_ref[...] = x_ref[...]


def _vmem_capacity_bytes() -> int:
    """Trace-time query of physical VMEM; conservative fallback if unavailable."""
    try:
        return int(pltpu.get_tpu_info().vmem_capacity_bytes)
    except Exception:
        return 64 * 1024 * 1024  # assume v7x-like (smallest) if query fails


def _generation_budgets() -> Tuple[int, int]:
    """Return (per_buffer_tile_bytes, scoped_vmem_limit_bytes) for this chip."""
    cap = _vmem_capacity_bytes()
    if cap >= 96 * 1024 * 1024:
        # v5e / v6e: 128 MiB physical VMEM — big tiles, generous scoped limit.
        return 8 * 1024 * 1024, 64 * 1024 * 1024
    # v7x: 64 MiB per TC — keep 2-in + 2-out double-buffering well under limit.
    return 4 * 1024 * 1024, 24 * 1024 * 1024


def _sublane_quantum(dtype) -> int:
    """Rows-per-vreg-sublane-tile: 8 for 4-byte, 16 for 2-byte, 32 for 1-byte."""
    itemsize = jnp.dtype(dtype).itemsize
    return max(8, 32 // max(1, itemsize))


def _choose_slab(total: int, sublane_q: int) -> Optional[Tuple[int, int]]:
    """Pick a lane-dense (rows, lanes) factorization: lanes a multiple of 128,
    preferring row counts aligned to the dtype's sublane quantum."""
    for lanes in (1024, 512, 256, 128):
        if total % lanes == 0 and (total // lanes) % sublane_q == 0:
            return total // lanes, lanes
    for lanes in (1024, 512, 256, 128):
        if total % lanes == 0:
            return total // lanes, lanes
    return None


def _pallas_identity_impl(x: jax.Array) -> jax.Array:
    """Tiled, lane-dense, donating identity pass over an arbitrary tensor."""
    orig_shape = x.shape
    total = x.size
    itemsize = jnp.dtype(x.dtype).itemsize
    sublane_q = _sublane_quantum(x.dtype)

    slab = _choose_slab(total, sublane_q)
    if slab is None:
        # TODO(synk): payload not a multiple of 128 elements — no lane-dense
        # slab; skip the kernel (still an exact identity, matching the spec).
        return x

    rows, lanes = slab
    per_buffer_bytes, vmem_limit = _generation_budgets()

    if rows % sublane_q == 0:
        # Byte-budget tile sizing, rounded down to the sublane quantum so every
        # block satisfies the (sublane, 128) divisibility rule with unmasked
        # full-width stores.
        budget_rows = (per_buffer_bytes // (lanes * itemsize)) // sublane_q * sublane_q
        tile_rows = min(rows, max(sublane_q, budget_rows))
    else:
        # Fallback slab: block must equal the full row dim (escape hatch of the
        # (8,128) rule). Only safe if the whole slab fits the per-buffer budget.
        if rows * lanes * itemsize > per_buffer_bytes:
            # TODO(synk): misaligned row count too large for a single block;
            # skip the kernel rather than emit masked partial stores.
            return x
        tile_rows = rows

    x2 = x.reshape(rows, lanes)
    grid = (pl.cdiv(rows, tile_rows),)

    out = pl.pallas_call(
        _copy_kernel,
        out_shape=jax.ShapeDtypeStruct((rows, lanes), x2.dtype),
        grid=grid,
        in_specs=[pl.BlockSpec((tile_rows, lanes), lambda i: (i, 0))],
        out_specs=pl.BlockSpec((tile_rows, lanes), lambda i: (i, 0)),
        # Output aliases the input HBM buffer; combined with jit-level donation
        # (below) this removes the second allocation and the defensive copy.
        input_output_aliases={0: 0},
        compiler_params=pltpu.CompilerParams(
            dimension_semantics=("parallel",),   # shards rows across v7x's 2 TCs
            vmem_limit_bytes=vmem_limit,         # generation-aware scoped VMEM
        ),
    )(x2)
    return out.reshape(orig_shape)


# Donation makes input_output_aliases real: callers must not reuse the argument.
_pallas_identity = jax.jit(_pallas_identity_impl, donate_argnums=0)


class DensityControllerImpl:
    """JAX/Pallas port of the (abstract, no-op) density controller base class."""

    def __init__(self, config=None, *args, **kwargs) -> None:
        self.config = config
        # No parameters: the PyTorch __init__ registers no weights/buffers.

    def forward(self, outputs: dict, batch, gaussian_model,
                global_step: int, pl_module=None) -> None:
        # Reference forward is `pass`: no compute, no mutation, returns None.
        # No kernel is launched here — the fastest faithful port is a genuine
        # no-op on the hot path.
        # TODO(synk): concrete subclasses (VanillaDensityController, etc.)
        # implement densify/prune logic; the base class has none to port.
        return None

    __call__ = forward

    def setup(self, stage: str, pl_module=None) -> None:
        pass

    def on_load_checkpoint(self, module, checkpoint) -> None:
        pass


if __name__ == "__main__":
    key = jax.random.PRNGKey(0)
    k_render, k_xyz = jax.random.split(key)

    # Small shapes consistent with what a density controller's forward sees:
    # a rendered image (NCHW) plus per-gaussian data in the model.
    render = jax.random.normal(k_render, (2, 4, 16, 16), dtype=jnp.float32)
    outputs = {"render": render}
    batch = {"camera_id": jnp.int32(0)}

    class _FakeGaussianModel:
        def __init__(self, k):
            self.xyz = jax.random.normal(k, (8, 3), dtype=jnp.float32)

    gaussian_model = _FakeGaussianModel(k_xyz)

    controller = DensityControllerImpl(config=None)
    controller.setup("fit", pl_module=None)

    # Run the Pallas kernel path once and verify identity semantics.  The
    # argument is DONATED, so pass a private copy and verify against the
    # untouched original.
    reference = jnp.copy(render)
    donated_input = jnp.copy(render)
    out = _pallas_identity(donated_input)
    jax.block_until_ready(out)
    assert out.shape == reference.shape and out.dtype == reference.dtype
    assert bool(jnp.all(out == reference))

    # Also exercise the dtype-aware (16-row sublane quantum) bf16 slab path.
    render_bf16 = reference.astype(jnp.bfloat16)
    out_bf16 = _pallas_identity(jnp.copy(render_bf16))
    jax.block_until_ready(out_bf16)
    assert out_bf16.dtype == jnp.bfloat16
    assert bool(jnp.all(out_bf16 == render_bf16))

    # Full forward call: must return None (no-op), mutating nothing, and
    # launching no kernel.
    result = controller(outputs, batch, gaussian_model, global_step=100,
                        pl_module=None)
    assert result is None
    jax.block_until_ready(outputs["render"])
    assert bool(jnp.all(outputs["render"] == reference))

    print("KERNEL_OK")
</pallas_src>

<mosaic_0001>
module attributes {stable_mosaic.version = 11 : i64} {
  func.func @_copy_kernel(%arg0: i32, %arg1: memref<8x256xf32, #tpu.memory_space<vmem>>, %arg2: memref<8x256xf32, #tpu.memory_space<vmem>>) attributes {dimension_semantics = [#tpu.dimension_semantics<parallel>], iteration_bounds = array<i64: 1>, scalar_prefetch = 0 : i64, scratch_operands = 0 : i64, tpu.core_type = #tpu.core_type<tc>, window_params = [{transform_indices = @transform_0, window_bounds = array<i64: 8, 256>}, {transform_indices = @transform_1, window_bounds = array<i64: 8, 256>}]} {
    %c0 = arith.constant 0 : index
    %c0_0 = arith.constant 0 : index
    %0 = vector.load %arg1[%c0, %c0_0] : memref<8x256xf32, #tpu.memory_space<vmem>>, vector<8x256xf32>
    %c0_1 = arith.constant 0 : index
    %c0_2 = arith.constant 0 : index
    %1 = vector.load %arg2[%c0_1, %c0_2] : memref<8x256xf32, #tpu.memory_space<vmem>>, vector<8x256xf32>
    tpu.vector_store %arg2[%c0_1, %c0_2], %0 {strides = array<i32>} : memref<8x256xf32, #tpu.memory_space<vmem>>, vector<8x256xf32>,
    return
  }
  func.func @transform_0(%arg0: i32) -> (i32, i32) {
    %c0_i32 = arith.constant 0 : i32
    %c0_i32_0 = arith.constant 0 : i32
    return %arg0, %c0_i32 : i32, i32
  }
  func.func @transform_1(%arg0: i32) -> (i32, i32) {
    %c0_i32 = arith.constant 0 : i32
    %c0_i32_0 = arith.constant 0 : i32
    return %arg0, %c0_i32 : i32, i32
  }
}

</mosaic_0001>

<bundles_post_ra>
// kernel: _pallas_identity_impl.1
= control target key start
LH: loop header
LB: loop body
LE: loop exit
PB: predicated region body
PF: predicated region fallthrough
CT: control target
= control target key end

     0   :  { %s38_s0 = inlined_call_operand.vmem [shape: f32[8,256], index: 0, kind: input, shape index: {}, may-alias: {0,1}]   ;;  %s39_s1 = inlined_call_operand.vmem [shape: f32[8,256], index: 1, kind: output, shape index: {}, may-alias: {0,1}]  }
   0x1   :  { %v8_v0 = vld [vmem:[%s38_s0] sm:$0xff]  ;;  %v9_v1 = vld [vmem:[%s38_s0 + $0x8] sm:$0xff] }
   0x2   :  { %10 = vst [vmem:[%s39_s1] sm:$0xff] %v8_v0 }
   0x3   :  { %11 = vst [vmem:[%s39_s1 + $0x8] sm:$0xff] %v9_v1 }

</bundles_post_ra>
